<compile_context>
chip_gen: v6e
topology: v6e:2x2x1
jax: 0.10.0
libtpu: 0.0.40
codegen_flags: <defaults>
</compile_context>

<pallas_src>
import functools

import jax
import jax.numpy as jnp
from jax.experimental import pallas as pl
from jax.experimental.pallas import tpu as pltpu


def _leaky_relu(v, slope=0.01):
    return jnp.where(v > 0, v, slope * v)


def _round_up(a, b):
    return ((a + b - 1) // b) * b


# ----------------------------------------------------------------------------
# Pass 1: fused fc1 -> leaky -> fc2 (+ per-column sum / sumsq accumulation)
# ----------------------------------------------------------------------------
def _mlp_stats_kernel(x_ref, w1_ref, b1_ref, w2h_ref, w2x_ref, b2_ref,
                      y_ref, sum_ref, ssq_ref, *, m_valid, tile_m):
    i = pl.program_id(0)

    @pl.when(i == 0)
    def _():
        sum_ref[...] = jnp.zeros_like(sum_ref)
        ssq_ref[...] = jnp.zeros_like(ssq_ref)

    x = x_ref[...]                                   # (tm, n_in), f32 or bf16
    w_dtype = w1_ref.dtype

    # fc1 + LeakyReLU   (f32 accumulation on the MXU)
    h = jnp.dot(x, w1_ref[...], preferred_element_type=jnp.float32) + b1_ref[...]
    h = _leaky_relu(h)
    # TODO(synk): nn.Dropout(p=do_prob) training-mode masking/rescale is not
    # reproduced; kernel implements eval-mode dropout (identity).

    # fc2 on cat([h, x], -1)  ==  h @ W2[:, :n_hid]^T + x @ W2[:, n_hid:]^T + b2
    y = (jnp.dot(h.astype(w_dtype), w2h_ref[...], preferred_element_type=jnp.float32)
         + jnp.dot(x, w2x_ref[...], preferred_element_type=jnp.float32)
         + b2_ref[...])                              # (tm, n_out) f32

    y_ref[...] = y

    # Masked per-column statistics (padded rows beyond m_valid contribute 0).
    row = jax.lax.broadcasted_iota(jnp.int32, (tile_m, 1), 0) + i * tile_m
    valid = (row < m_valid).astype(jnp.float32)      # (tm, 1)
    yv = y * valid
    sum_ref[...] += jnp.sum(yv, axis=0, keepdims=True)
    ssq_ref[...] += jnp.sum(yv * y, axis=0, keepdims=True)


# ----------------------------------------------------------------------------
# Pass 2: folded BatchNorm affine + optional LeakyReLU (lane-dense streaming)
# ----------------------------------------------------------------------------
def _bn_act_kernel(y_ref, scale_ref, shift_ref, o_ref, *, out_act):
    out = y_ref[...] * scale_ref[...] + shift_ref[...]
    if out_act:
        out = _leaky_relu(out)
    o_ref[...] = out.astype(o_ref.dtype)


# ----------------------------------------------------------------------------
# Wrapper
# ----------------------------------------------------------------------------
def mlp_jptrans_forward(x, params, *, out_act=True, tile_m=2048, matmul_dtype=None):
    """x: (B, N, n_in)  ->  (B, N, n_out).

    params: dict with pre-transposed/split weights (see pack_params).
    matmul_dtype: optionally cast x and the weight matrices (e.g. jnp.bfloat16)
                  to halve the streaming HBM bytes and double MXU rate on v6e/v7x;
                  accumulation / activations / BN stay f32.
    """
    B, N, n_in = x.shape
    M = B * N

    w1_t = params["w1_t"]          # (n_in, n_hid)
    w2h_t = params["w2h_t"]        # (n_hid, n_out)
    w2x_t = params["w2x_t"]        # (n_in, n_out)
    b1 = params["b1"]              # (1, n_hid)
    b2 = params["b2"]              # (1, n_out)
    gamma = params["gamma"]        # (1, n_out)
    beta = params["beta"]          # (1, n_out)
    n_hid = w1_t.shape[1]
    n_out = w2h_t.shape[1]

    if matmul_dtype is not None:
        w1_t = w1_t.astype(matmul_dtype)
        w2h_t = w2h_t.astype(matmul_dtype)
        w2x_t = w2x_t.astype(matmul_dtype)

    # Lane-packing factor for the normalize pass: view (M, n_out) as
    # (M/pack, n_out*pack) so stores are 128-lane dense when n_out is small.
    pack = 128 // n_out if (n_out < 128 and 128 % n_out == 0) else 1

    base = max(8, pack)                      # sublane & pack granularity
    tm = min(tile_m, _round_up(M, base))
    tm = _round_up(tm, base)
    M_pad = _round_up(M, tm)
    grid_m = M_pad // tm

    x2d = x.reshape(M, n_in)
    if matmul_dtype is not None:
        x2d = x2d.astype(matmul_dtype)
    if M_pad != M:
        x2d = jnp.pad(x2d, ((0, M_pad - M), (0, 0)))

    const2d = lambda shape: pl.BlockSpec(shape, lambda i: (0, 0))

    # ---------------- pass 1: matmuls + per-column sum / sumsq ----------------
    y_pad, col_sum, col_ssq = pl.pallas_call(
        functools.partial(_mlp_stats_kernel, m_valid=M, tile_m=tm),
        grid=(grid_m,),
        out_shape=(
            jax.ShapeDtypeStruct((M_pad, n_out), jnp.float32),
            jax.ShapeDtypeStruct((1, n_out), jnp.float32),
            jax.ShapeDtypeStruct((1, n_out), jnp.float32),
        ),
        in_specs=[
            pl.BlockSpec((tm, n_in), lambda i: (i, 0)),   # x tile: streams
            const2d((n_in, n_hid)),                       # weights: resident
            const2d((1, n_hid)),
            const2d((n_hid, n_out)),
            const2d((n_in, n_out)),
            const2d((1, n_out)),
        ],
        out_specs=(
            pl.BlockSpec((tm, n_out), lambda i: (i, 0)),  # y tile: streams
            pl.BlockSpec((1, n_out), lambda i: (0, 0)),   # sum: resident accumulator
            pl.BlockSpec((1, n_out), lambda i: (0, 0)),   # sumsq: resident accumulator
        ),
        compiler_params=pltpu.CompilerParams(dimension_semantics=("arbitrary",)),
    )(x2d, w1_t, b1, w2h_t, w2x_t, b2)

    # ------------- tiny host-side combine: fold BN into one FMA -------------
    inv_m = jnp.float32(1.0 / M)
    mean = col_sum * inv_m
    var = jnp.maximum(col_ssq * inv_m - mean * mean, 0.0)   # biased variance
    scale = gamma * jax.lax.rsqrt(var + 1e-5)
    shift = beta - mean * scale

    # ---------------- pass 2: lane-dense normalize + activation ----------------
    lanes = n_out * pack
    tm2 = tm // pack
    y_packed = y_pad.reshape(M_pad // pack, lanes)          # free contiguous view
    scale_p = jnp.tile(scale, (1, pack))
    shift_p = jnp.tile(shift, (1, pack))

    out_packed = pl.pallas_call(
        functools.partial(_bn_act_kernel, out_act=out_act),
        grid=(grid_m,),
        out_shape=jax.ShapeDtypeStruct((M_pad // pack, lanes), x.dtype),
        in_specs=[
            pl.BlockSpec((tm2, lanes), lambda i: (i, 0)),
            const2d((1, lanes)),
            const2d((1, lanes)),
        ],
        out_specs=pl.BlockSpec((tm2, lanes), lambda i: (i, 0)),
        compiler_params=pltpu.CompilerParams(dimension_semantics=("parallel",)),
    )(y_packed, scale_p, shift_p)

    out2d = out_packed.reshape(M_pad, n_out)[:M]
    return out2d.reshape(B, N, n_out)


# ----------------------------------------------------------------------------
# Parameter construction (mirrors Mlp_JpTrans.init_weights) + one-time packing
# ----------------------------------------------------------------------------
def init_params_raw(key, n_in, n_hid, n_out):
    """PyTorch-layout params, same init as Mlp_JpTrans.init_weights()."""
    k1, k2 = jax.random.split(key)

    def xavier_normal(k, fan_out, fan_in):
        std = (2.0 / (fan_in + fan_out)) ** 0.5
        return std * jax.random.normal(k, (fan_out, fan_in), dtype=jnp.float32)

    return {
        "w1": xavier_normal(k1, n_hid, n_in),               # fc1.weight (n_hid, n_in)
        "b1": jnp.full((n_hid,), 0.1, dtype=jnp.float32),   # fc1.bias = 0.1
        "w2": xavier_normal(k2, n_out, n_hid + n_in),       # fc2.weight (n_out, n_hid+n_in)
        "b2": jnp.full((n_out,), 0.1, dtype=jnp.float32),   # fc2.bias = 0.1
        "bn_w": jnp.ones((n_out,), dtype=jnp.float32),      # bn.weight = 1
        "bn_b": jnp.zeros((n_out,), dtype=jnp.float32),     # bn.bias   = 0
    }


def pack_params(raw):
    """One-time transpose/split so no per-call weight copies sit on the critical path."""
    n_hid = raw["w1"].shape[0]
    w2 = raw["w2"]
    return {
        "w1_t": raw["w1"].T,                 # (n_in, n_hid)
        "w2h_t": w2[:, :n_hid].T,            # (n_hid, n_out)
        "w2x_t": w2[:, n_hid:].T,            # (n_in,  n_out)
        "b1": raw["b1"].reshape(1, -1),
        "b2": raw["b2"].reshape(1, -1),
        "gamma": raw["bn_w"].reshape(1, -1),
        "beta": raw["bn_b"].reshape(1, -1),
    }


# ----------------------------------------------------------------------------
# Pure-JAX reference (for a correctness sanity check in the demo)
# ----------------------------------------------------------------------------
def reference_forward(x, raw, *, out_act=True):
    B, N, _ = x.shape
    h = _leaky_relu(x @ raw["w1"].T + raw["b1"])
    y = jnp.concatenate([h, x], axis=-1) @ raw["w2"].T + raw["b2"]
    y2 = y.reshape(B * N, -1)
    mean = jnp.mean(y2, axis=0)
    var = jnp.var(y2, axis=0)                       # biased, matches BN batch stats
    out = (y2 - mean) * jax.lax.rsqrt(var + 1e-5) * raw["bn_w"] + raw["bn_b"]
    if out_act:
        out = _leaky_relu(out)
    return out.reshape(B, N, -1)


if __name__ == "__main__":
    # Small shapes consistent with the module: x is (batch, seq, n_in).
    B, N = 2, 8
    n_in, n_hid, n_out = 32, 64, 32

    key = jax.random.PRNGKey(0)
    kx, kp = jax.random.split(key)
    x = jax.random.normal(kx, (B, N, n_in), dtype=jnp.float32)
    raw = init_params_raw(kp, n_in, n_hid, n_out)
    params = pack_params(raw)

    for act in (True, False):
        out = mlp_jptrans_forward(x, params, out_act=act)
        jax.block_until_ready(out)
        assert out.shape == (B, N, n_out)
        ref = reference_forward(x, raw, out_act=act)
        err = float(jnp.max(jnp.abs(out - ref)))
        assert err < 1e-3, f"mismatch vs reference (out_act={act}): {err}"

    print("KERNEL_OK")
</pallas_src>

<mosaic_0001>
module attributes {stable_mosaic.version = 11 : i64} {
  func.func @_mlp_stats_kernel(%arg0: i32, %arg1: memref<16x32xf32, #tpu.memory_space<vmem>>, %arg2: memref<32x64xf32, #tpu.memory_space<vmem>>, %arg3: memref<1x64xf32, #tpu.memory_space<vmem>>, %arg4: memref<64x32xf32, #tpu.memory_space<vmem>>, %arg5: memref<32x32xf32, #tpu.memory_space<vmem>>, %arg6: memref<1x32xf32, #tpu.memory_space<vmem>>, %arg7: memref<16x32xf32, #tpu.memory_space<vmem>>, %arg8: memref<1x32xf32, #tpu.memory_space<vmem>>, %arg9: memref<1x32xf32, #tpu.memory_space<vmem>>) attributes {dimension_semantics = [#tpu.dimension_semantics<arbitrary>], iteration_bounds = array<i64: 1>, scalar_prefetch = 0 : i64, scratch_operands = 0 : i64, tpu.core_type = #tpu.core_type<tc>, window_params = [{transform_indices = @transform_0, window_bounds = array<i64: 16, 32>}, {pipeline_mode = #tpu.pipeline_mode<synchronous>, transform_indices = @transform_1, window_bounds = array<i64: 32, 64>}, {pipeline_mode = #tpu.pipeline_mode<synchronous>, transform_indices = @transform_2, window_bounds = array<i64: 1, 64>}, {pipeline_mode = #tpu.pipeline_mode<synchronous>, transform_indices = @transform_3, window_bounds = array<i64: 64, 32>}, {pipeline_mode = #tpu.pipeline_mode<synchronous>, transform_indices = @transform_4, window_bounds = array<i64: 32, 32>}, {pipeline_mode = #tpu.pipeline_mode<synchronous>, transform_indices = @transform_5, window_bounds = array<i64: 1, 32>}, {transform_indices = @transform_6, window_bounds = array<i64: 16, 32>}, {pipeline_mode = #tpu.pipeline_mode<synchronous>, transform_indices = @transform_7, window_bounds = array<i64: 1, 32>}, {pipeline_mode = #tpu.pipeline_mode<synchronous>, transform_indices = @transform_8, window_bounds = array<i64: 1, 32>}]} {
    %c0_i32 = arith.constant 0 : i32
    %0 = arith.cmpi eq, %arg0, %c0_i32 : i32
    %1 = arith.extui %0 : i1 to i32
    %c0_i32_0 = arith.constant 0 : i32
    %2 = arith.cmpi ne, %1, %c0_i32_0 : i32
    scf.if %2 {
      %cst_29 = arith.constant 0.000000e+00 : f32
      %44 = vector.broadcast %cst_29 : f32 to vector<1x32xf32>
      %c0_30 = arith.constant 0 : index
      %c0_31 = arith.constant 0 : index
      %45 = vector.load %arg8[%c0_30, %c0_31] : memref<1x32xf32, #tpu.memory_space<vmem>>, vector<1x32xf32>
      tpu.vector_store %arg8[%c0_30, %c0_31], %44 {strides = array<i32>} : memref<1x32xf32, #tpu.memory_space<vmem>>, vector<1x32xf32>,
      %cst_32 = arith.constant 0.000000e+00 : f32
      %46 = vector.broadcast %cst_32 : f32 to vector<1x32xf32>
      %c0_33 = arith.constant 0 : index
      %c0_34 = arith.constant 0 : index
      %47 = vector.load %arg9[%c0_33, %c0_34] : memref<1x32xf32, #tpu.memory_space<vmem>>, vector<1x32xf32>
      tpu.vector_store %arg9[%c0_33, %c0_34], %46 {strides = array<i32>} : memref<1x32xf32, #tpu.memory_space<vmem>>, vector<1x32xf32>,
    } else {
    }
    %c0 = arith.constant 0 : index
    %c0_1 = arith.constant 0 : index
    %3 = vector.load %arg1[%c0, %c0_1] : memref<16x32xf32, #tpu.memory_space<vmem>>, vector<16x32xf32>
    %c0_2 = arith.constant 0 : index
    %c0_3 = arith.constant 0 : index
    %4 = vector.load %arg2[%c0_2, %c0_3] : memref<32x64xf32, #tpu.memory_space<vmem>>, vector<32x64xf32>
    %cst = arith.constant dense<0.000000e+00> : vector<16x64xf32>
    %5 = tpu.matmul %3, %4, %cst {dimension_numbers = #tpu.dot_dimension_numbers<[1], [0], [0], [1], [0, 0, 1, 1], [], []>} : vector<16x32xf32>, vector<32x64xf32>, vector<16x64xf32> -> vector<16x64xf32>
    %c0_4 = arith.constant 0 : index
    %c0_5 = arith.constant 0 : index
    %6 = vector.load %arg3[%c0_4, %c0_5] : memref<1x64xf32, #tpu.memory_space<vmem>>, vector<1x64xf32>
    %7 = vector.broadcast %6 : vector<1x64xf32> to vector<16x64xf32>
    %8 = arith.addf %5, %7 : vector<16x64xf32>
    %cst_6 = arith.constant 0.000000e+00 : f32
    %9 = vector.broadcast %cst_6 : f32 to vector<16x64xf32>
    %10 = arith.cmpf ogt, %8, %9 : vector<16x64xf32>
    %cst_7 = arith.constant 0.00999999977 : f32
    %11 = vector.broadcast %cst_7 : f32 to vector<16x64xf32>
    %12 = arith.mulf %11, %8 : vector<16x64xf32>
    %13 = arith.select %10, %8, %12 : vector<16x64xi1>, vector<16x64xf32>
    %c0_8 = arith.constant 0 : index
    %c0_9 = arith.constant 0 : index
    %14 = vector.load %arg4[%c0_8, %c0_9] : memref<64x32xf32, #tpu.memory_space<vmem>>, vector<64x32xf32>
    %cst_10 = arith.constant dense<0.000000e+00> : vector<16x32xf32>
    %15 = tpu.matmul %13, %14, %cst_10 {dimension_numbers = #tpu.dot_dimension_numbers<[1], [0], [0], [1], [0, 0, 1, 1], [], []>} : vector<16x64xf32>, vector<64x32xf32>, vector<16x32xf32> -> vector<16x32xf32>
    %c0_11 = arith.constant 0 : index
    %c0_12 = arith.constant 0 : index
    %16 = vector.load %arg5[%c0_11, %c0_12] : memref<32x32xf32, #tpu.memory_space<vmem>>, vector<32x32xf32>
    %cst_13 = arith.constant dense<0.000000e+00> : vector<16x32xf32>
    %17 = tpu.matmul %3, %16, %cst_13 {dimension_numbers = #tpu.dot_dimension_numbers<[1], [0], [0], [1], [0, 0, 1, 1], [], []>} : vector<16x32xf32>, vector<32x32xf32>, vector<16x32xf32> -> vector<16x32xf32>
    %18 = arith.addf %15, %17 : vector<16x32xf32>
    %c0_14 = arith.constant 0 : index
    %c0_15 = arith.constant 0 : index
    %19 = vector.load %arg6[%c0_14, %c0_15] : memref<1x32xf32, #tpu.memory_space<vmem>>, vector<1x32xf32>
    %20 = vector.broadcast %19 : vector<1x32xf32> to vector<16x32xf32>
    %21 = arith.addf %18, %20 : vector<16x32xf32>
    %c0_16 = arith.constant 0 : index
    %c0_17 = arith.constant 0 : index
    %22 = vector.load %arg7[%c0_16, %c0_17] : memref<16x32xf32, #tpu.memory_space<vmem>>, vector<16x32xf32>
    tpu.vector_store %arg7[%c0_16, %c0_17], %21 {strides = array<i32>} : memref<16x32xf32, #tpu.memory_space<vmem>>, vector<16x32xf32>,
    %23 = tpu.iota {dimensions = array<i32: 0>} : vector<16x1xi32>
    %c16_i32 = arith.constant 16 : i32
    %24 = arith.muli %arg0, %c16_i32 : i32
    %25 = vector.broadcast %24 : i32 to vector<16x1xi32>
    %26 = arith.addi %23, %25 : vector<16x1xi32>
    %c16_i32_18 = arith.constant 16 : i32
    %27 = vector.broadcast %c16_i32_18 : i32 to vector<16x1xi32>
    %28 = arith.cmpi slt, %26, %27 : vector<16x1xi32>
    %29 = arith.extui %28 : vector<16x1xi1> to vector<16x1xi32>
    %30 = arith.sitofp %29 : vector<16x1xi32> to vector<16x1xf32>
    %31 = vector.broadcast %30 : vector<16x1xf32> to vector<16x32xf32>
    %32 = arith.mulf %21, %31 : vector<16x32xf32>
    %c0_19 = arith.constant 0 : index
    %c0_20 = arith.constant 0 : index
    %33 = vector.load %arg8[%c0_19, %c0_20] : memref<1x32xf32, #tpu.memory_space<vmem>>, vector<1x32xf32>
    %cst_21 = arith.constant dense<0.000000e+00> : vector<32xf32>
    %34 = vector.multi_reduction <add>, %32, %cst_21 [0] : vector<16x32xf32> to vector<32xf32>
    %35 = vector.shape_cast %34 : vector<32xf32> to vector<1x32xf32>
    %36 = arith.addf %33, %35 : vector<1x32xf32>
    %c0_22 = arith.constant 0 : index
    %c0_23 = arith.constant 0 : index
    %37 = vector.load %arg8[%c0_22, %c0_23] : memref<1x32xf32, #tpu.memory_space<vmem>>, vector<1x32xf32>
    tpu.vector_store %arg8[%c0_22, %c0_23], %36 {strides = array<i32>} : memref<1x32xf32, #tpu.memory_space<vmem>>, vector<1x32xf32>,
    %c0_24 = arith.constant 0 : index
    %c0_25 = arith.constant 0 : index
    %38 = vector.load %arg9[%c0_24, %c0_25] : memref<1x32xf32, #tpu.memory_space<vmem>>, vector<1x32xf32>
    %39 = arith.mulf %32, %21 : vector<16x32xf32>
    %cst_26 = arith.constant dense<0.000000e+00> : vector<32xf32>
    %40 = vector.multi_reduction <add>, %39, %cst_26 [0] : vector<16x32xf32> to vector<32xf32>
    %41 = vector.shape_cast %40 : vector<32xf32> to vector<1x32xf32>
    %42 = arith.addf %38, %41 : vector<1x32xf32>
    %c0_27 = arith.constant 0 : index
    %c0_28 = arith.constant 0 : index
    %43 = vector.load %arg9[%c0_27, %c0_28] : memref<1x32xf32, #tpu.memory_space<vmem>>, vector<1x32xf32>
    tpu.vector_store %arg9[%c0_27, %c0_28], %42 {strides = array<i32>} : memref<1x32xf32, #tpu.memory_space<vmem>>, vector<1x32xf32>,
    return
  }
  func.func @transform_0(%arg0: i32) -> (i32, i32) {
    %c0_i32 = arith.constant 0 : i32
    %c0_i32_0 = arith.constant 0 : i32
    return %arg0, %c0_i32 : i32, i32
  }
  func.func @transform_1(%arg0: i32) -> (i32, i32) {
    %c0_i32 = arith.constant 0 : i32
    %c0_i32_0 = arith.constant 0 : i32
    %c0_i32_1 = arith.constant 0 : i32
    return %c0_i32, %c0_i32_0 : i32, i32
  }
  func.func @transform_2(%arg0: i32) -> (i32, i32) {
    %c0_i32 = arith.constant 0 : i32
    %c0_i32_0 = arith.constant 0 : i32
    %c0_i32_1 = arith.constant 0 : i32
    return %c0_i32, %c0_i32_0 : i32, i32
  }
  func.func @transform_3(%arg0: i32) -> (i32, i32) {
    %c0_i32 = arith.constant 0 : i32
    %c0_i32_0 = arith.constant 0 : i32
    %c0_i32_1 = arith.constant 0 : i32
    return %c0_i32, %c0_i32_0 : i32, i32
  }
  func.func @transform_4(%arg0: i32) -> (i32, i32) {
    %c0_i32 = arith.constant 0 : i32
    %c0_i32_0 = arith.constant 0 : i32
    %c0_i32_1 = arith.constant 0 : i32
    return %c0_i32, %c0_i32_0 : i32, i32
  }
  func.func @transform_5(%arg0: i32) -> (i32, i32) {
    %c0_i32 = arith.constant 0 : i32
    %c0_i32_0 = arith.constant 0 : i32
    %c0_i32_1 = arith.constant 0 : i32
    return %c0_i32, %c0_i32_0 : i32, i32
  }
  func.func @transform_6(%arg0: i32) -> (i32, i32) {
    %c0_i32 = arith.constant 0 : i32
    %c0_i32_0 = arith.constant 0 : i32
    return %arg0, %c0_i32 : i32, i32
  }
  func.func @transform_7(%arg0: i32) -> (i32, i32) {
    %c0_i32 = arith.constant 0 : i32
    %c0_i32_0 = arith.constant 0 : i32
    %c0_i32_1 = arith.constant 0 : i32
    return %c0_i32, %c0_i32_0 : i32, i32
  }
  func.func @transform_8(%arg0: i32) -> (i32, i32) {
    %c0_i32 = arith.constant 0 : i32
    %c0_i32_0 = arith.constant 0 : i32
    %c0_i32_1 = arith.constant 0 : i32
    return %c0_i32, %c0_i32_0 : i32, i32
  }
}

</mosaic_0001>

<bundles_post_ra>
// kernel: tpu_custom_call.1
= control target key start
LH: loop header
LB: loop body
LE: loop exit
PB: predicated region body
PF: predicated region fallthrough
CT: control target
= control target key end

     0   :  { %14 = vsyncpa [#allocation3], 0  ;;  %vm48_vm0 = vcmask 261120   ;;  %s676_s0 = inlined_call_operand.vmem [shape: f32[16,32], index: 0, kind: input, shape index: {}]   ;;  %s677_s1 = inlined_call_operand.vmem [shape: f32[32,64], index: 1, kind: input, shape index: {}]   ;;  %s678_s2 = inlined_call_operand.vmem [shape: f32[1,64], index: 2, kind: input, shape index: {}]   ;;  %s679_s3 = inlined_call_operand.vmem [shape: f32[64,32], index: 3, kind: input, shape index: {}]   ;;  %s680_s4 = inlined_call_operand.vmem [shape: f32[32,32], index: 4, kind: input, shape index: {}]   ;;  %s681_s5 = inlined_call_operand.vmem [shape: f32[1,32], index: 5, kind: input, shape index: {}]   ;;  %s682_s6 = inlined_call_operand.hbm [shape: f32[16,32], index: 6, kind: output, shape index: {0}]   ;;  %s683_s7 = inlined_call_operand.hbm [shape: f32[1,32], index: 7, kind: output, shape index: {1}]   ;;  %s684_s8 = inlined_call_operand.hbm [shape: f32[1,32], index: 8, kind: output, shape index: {2}]  }
   0x1   :  { %v40_v0 = vld [vmem:[%s677_s1 + $0x18] sm:$0xff]  ;;  %v39_v1 = vld [vmem:[%s677_s1 + $0x10] sm:$0xff]  ;;  %v35_v2 = vld [vmem:[%s676_s0] sm:$0xff] }
   0x2   :  { %431 = vmatprep.subr.mxu1 %v40_v0  ;;  %v38_v3 = vld [vmem:[%s677_s1 + $0x8] sm:$0xff]  ;;  %439 = vmatprep.mubr.msk.f32.mxu1 %vm48_vm0, %v35_v2  ;;  %v143_v4 = vld [vmem:[%s679_s3 + $0x38] sm:$0xff]  ;;  %v142_v5 = vld [vmem:[%s679_s3 + $0x30] sm:$0xff] }
   0x3   :  { %432 = vmatpush3.msra.mxu1 %v40_v0  ;;  %453 = vmatprep.subr.mxu0 %v143_v4 }
   0x4   :  { %433 = vmatprep.subr.mxu1 %v39_v1 }
   0x5   :  { %15 = vsyncpa [#allocation5], 0  ;;  %434 = vmatpush3.msra.mxu1 %v39_v1  ;;  %v37_v6 = vld [vmem:[%s677_s1] sm:$0xff]  ;;  %454 = vmatpush3.msra.mxu0 %v143_v4  ;;  %v141_v7 = vld [vmem:[%s679_s3 + $0x28] sm:$0xff]  ;;  %vm223_vm3 = vcmask 523264   ;;  %vm32_vm4 = vcmask 253952  }
   0x6   :  { %435 = vmatprep.subr.mxu1 %v38_v3  ;;  %455 = vmatprep.subr.mxu0 %v142_v5  ;;  %v36_v8 = vld [vmem:[%s676_s0 + $0x8] sm:$0xff]  ;;  %v147_v9 = vld [vmem:[%s680_s4 + $0x18] sm:$0xff]  ;;  %v140_v10 = vld [vmem:[%s679_s3 + $0x20] sm:$0xff]  ;;  %v542_v27 = vmov 0.0   ;;  %s543_s18 = smov [#allocation2]  }
   0x7   :  { %436 = vmatpush3.msra.mxu1 %v38_v3  ;;  %456 = vmatpush3.msra.mxu0 %v142_v5  ;;  %v146_v11 = vld [vmem:[%s680_s4 + $0x10] sm:$0xff]  ;;  %v139_v12 = vld [vmem:[%s679_s3 + $0x18] sm:$0xff]  ;;  %v145_v13 = vld [vmem:[%s680_s4 + $0x8] sm:$0xff]  ;;  %33 = vst.msk [vmem:[#allocation4] sm:$0x1] %vm32_vm4, %v542_v27  ;;  %s363_s19 = sshll.u32 %s543_s18, 4  ;;  %s364_s19 = int_to_ptr.vmem [resolvable:$true] %s363_s19 }
   0x8   :  { %437 = vmatprep.subr.mxu1 %v37_v6  ;;  %457 = vmatprep.subr.mxu0 %v141_v7  ;;  %v138_v14 = vld [vmem:[%s679_s3 + $0x10] sm:$0xff]  ;;  %v144_v15 = vld [vmem:[%s680_s4] sm:$0xff]  ;;  %v137_v16 = vld [vmem:[%s679_s3 + $0x8] sm:$0xff]  ;;  %34 = vst.msk [vmem:[#allocation6] sm:$0x1] %vm32_vm4, %v542_v27  ;;  %p483_p1 = scmp.lt.s32.totalorder %s364_s19, %s364_s19 }
   0x9   :  { %438 = vmatpush3.msra.mxu1 %v37_v6  ;;  %458 = vmatpush3.msra.mxu0 %v141_v7  ;;  %v136_v17 = vld [vmem:[%s679_s3] sm:$0xff] }
   0xa   :  { %440 = vmatmul.mubr.msk.f32.vlgmr.msra.gmra.mxu1 %vm48_vm0, %v36_v8  ;;  %442 = vmatprep.subr.mxu1 %v147_v9  ;;  %v401_v18 = vld [vmem:[%s678_s2] ss:$0 sm:$0xff] }
   0xb   :  { %459 = vmatprep.subr.mxu0 %v140_v10  ;;  %443 = vmatpush3.msra.mxu1 %v147_v9  ;;  %v408_v30 = vld [vmem:[%s681_s5] ss:$0 sm:$0xff]  ;;  %s478_s5 = scalar_lea.vmem %s364_s19, 256 }
   0xc   :  { %460 = vmatpush3.msra.mxu0 %v140_v10  ;;  %450 = vmatprep.mubr.msk.f32.mxu1 %vm48_vm0, %v35_v2  ;;  %p479_p0 = scmp.ne.s32.totalorder %s364_s19, %s478_s5  ;;  %p484_p2 = scmp.lt.s32.totalorder %s478_s5, %s478_s5 }
   0xd   :  { %444 = vmatprep.subr.mxu1 %v146_v11  ;;  %461 = vmatprep.subr.mxu0 %v139_v12 }
   0xe   :  { %445 = vmatpush3.msra.mxu1 %v146_v11  ;;  %462 = vmatpush3.msra.mxu0 %v139_v12  ;;  %p485_p3 = por %p484_p2, %p483_p1 }
   0xf   :  { %446 = vmatprep.subr.mxu1 %v145_v13  ;;  %463 = vmatprep.subr.mxu0 %v138_v14 }
  0x10   :  { %447 = vmatpush3.msra.mxu1 %v145_v13  ;;  %464 = vmatpush3.msra.mxu0 %v138_v14  ;;  %p486_p4 = pnand %p485_p3, %p479_p0 }
  0x11   :  { %448 = vmatprep.subr.mxu1 %v144_v15  ;;  %465 = vmatprep.subr.mxu0 %v137_v16 }
  0x12   :  { %449 = vmatpush3.msra.mxu1 %v144_v15  ;;  %466 = vmatpush3.msra.mxu0 %v137_v16 }
  0x13   :  { %451 = vmatmul.mubr.msk.f32.vlgmr.msra.gmra.mxu1 %vm48_vm0, %v36_v8  ;;  %467 = vmatprep.subr.mxu0 %v136_v17 }
  0x14   :  { %468 = vmatpush3.msra.mxu0 %v136_v17 }
  0xca   :  { %v441_v19 = vpop.f32.mrf.mxu1 }
  0xcb   :  { %v127_v20 = vadd.f32 %v441_v19, %v401_v18 }
  0xcc   :  { %v121_v21 = vpop.f32.mrf.mxu1 }
  0xcd   :  { %v122_v22 = vadd.f32 %v401_v18, %v121_v21  ;;  %v133_v23 = vmul.f32 0.01, %v127_v20  ;;  %vm131_vm1 = vcmp.gt.f32.partialorder %v127_v20, 0.0 }
  0xcf   :  { %vm130_vm2 = vcmp.gt.f32.partialorder %v122_v22, 0.0  ;;  %v132_v24 = vmul.f32 0.01, %v122_v22  ;;  %v135_v26 = vsel %vm131_vm1, %v127_v20, %v133_v23 }
  0xd1   :  { %v134_v25 = vsel %vm130_vm2, %v122_v22, %v132_v24 }
  0xd2   :  { %469 = vmatprep.mubr.msk.f32.mxu0 %vm223_vm3, %v134_v25 }
  0xd3   :  { %470 = vmatmul.mubr.msk.f32.vlgmr.msra.gmra.mxu0 %vm223_vm3, %v135_v26  ;;  %v452_v28 = vpop.f32.mrf.mxu1 }
  0xd5   :  { %v214_v32 = vpop.f32.mrf.mxu1 }
 0x193   :  { %v471_v29 = vpop.f32.mrf.mxu0 }
 0x194   :  { %v302_v31 = vadd.f32 %v471_v29, %v452_v28 }
 0x195   :  { %v296_v33 = vpop.f32.mrf.mxu0 }
 0x196   :  { %v313_v34 = vadd.f32 %v408_v30, %v302_v31  ;;  %v297_v35 = vadd.f32 %v296_v33, %v214_v32 }
 0x198   :  { %v346_v36 = vmul.f32 %v313_v34, %v313_v34  ;;  %315 = vst.msk [vmem:[#allocation2 + $0x8] sm:$0xff] %vm48_vm0, %v313_v34  ;;  %v312_v37 = vadd.f32 %v408_v30, %v297_v35  ;;  %v333_v38 = vsel %vm48_vm0, %v313_v34, 0.0 }
 0x19a   :  { %v332_v39 = vsel %vm48_vm0, %v312_v37, 0.0  ;;  %v345_v40 = vmul.f32 %v312_v37, %v312_v37  ;;  %314 = vst.msk [vmem:[#allocation2] sm:$0xff] %vm48_vm0, %v312_v37 }
 0x19b   :  { %v334_v41 = vadd.f32 %v333_v38, %v332_v39 }
 0x19c   :  { %489 = shalt.err (!%p486_p4)
}
 0x19d   :  { %s544_s20 = smov 128   ;;  %s545_s21 = smov 8   ;;  %v348_v42 = vsel %vm48_vm0, %v346_v36, 0.0  ;;  %v347_v43 = vsel %vm48_vm0, %v345_v40, 0.0  ;;  %v335_v44 = vrot.slane %v334_v41, 4 }
 0x19e   :  { %369 = dma.vmem_to_hbm [thread:$0]  %s364_s19, 256, %s682_s6, [#allocation3], %s544_s20, %s544_s20, %s545_s21   ;;  %v349_v45 = vadd.f32 %v348_v42, %v347_v43  ;;  %v331_v54 = vld [vmem:[#allocation4] sm:$0x1]  ;;  %v344_v57 = vld [vmem:[#allocation6] sm:$0x1] }
 0x19f   :  { %v336_v46 = vadd.f32 %v335_v44, %v334_v41  ;;  %s546_s24 = smov [#allocation4]   ;;  %s547_s6 = smov [#allocation6]  }
 0x1a0   :  { %v350_v47 = vrot.slane %v349_v45, 4  ;;  %s376_s1 = sshll.u32 %s546_s24, 4  ;;  %s386_s25 = sshll.u32 %s547_s6, 4  ;;  %s377_s1 = int_to_ptr.vmem [resolvable:$true] %s376_s1  ;;  %s387_s25 = int_to_ptr.vmem [resolvable:$true] %s386_s25 }
 0x1a1   :  { %v337_v48 = vrot.slane %v336_v46, 2  ;;  %s498_s0 = scalar_lea.vmem %s377_s1, 16  ;;  %s502_s26 = scalar_lea.vmem %s377_s1, 32 }
 0x1a2   :  { %v351_v49 = vadd.f32 %v350_v47, %v349_v45  ;;  %p499_p5 = scmp.ne.s32.totalorder %s377_s1, %s498_s0  ;;  %p503_p6 = scmp.lt.s32.totalorder %s377_s1, %s377_s1 }
 0x1a3   :  { %v338_v50 = vadd.f32 %v337_v48, %v336_v46  ;;  %p504_p7 = scmp.lt.s32.totalorder %s502_s26, %s498_s0 }
 0x1a4   :  { %v352_v51 = vrot.slane %v351_v49, 2 }
 0x1a5   :  { %v339_v52 = vrot.slane %v338_v50, 1  ;;  %p505_p8 = por %p504_p7, %p503_p6 }
 0x1a6   :  { %v353_v53 = vadd.f32 %v352_v51, %v351_v49 }
 0x1a7   :  { %v340_v55 = vadd.f32 %v339_v52, %v338_v50  ;;  %p506_p9 = pnand %p505_p8, %p499_p5 }
 0x1a8   :  { %v354_v56 = vrot.slane %v353_v53, 1 }
 0x1a9   :  { %v341_v58 = vadd.f32 %v340_v55, %v331_v54 }
 0x1aa   :  { %v355_v59 = vadd.f32 %v354_v56, %v353_v53 }
 0x1ab   :  { %343 = vst.msk [vmem:[#allocation4] sm:$0x1] %vm32_vm4, %v341_v58 }
 0x1ac   :  { %v356_v60 = vadd.f32 %v355_v59, %v344_v57 }
 0x1ad   :  { %509 = shalt.err (!%p506_p9)
}
 0x1ae   :  { %379 = dma.vmem_to_hbm [thread:$0]  %s377_s1, 16, %s683_s7, [#allocation5]   ;;  %357 = vst.msk [vmem:[#allocation6] sm:$0x1] %vm32_vm4, %v356_v60 }
 0x1af   :  { %s518_s29 = scalar_lea.vmem %s387_s25, 16  ;;  %s522_s30 = scalar_lea.vmem %s387_s25, 32 }
 0x1b0   :  { %p519_p10 = scmp.ne.s32.totalorder %s387_s25, %s518_s29  ;;  %p523_p11 = scmp.lt.s32.totalorder %s387_s25, %s387_s25 }
 0x1b1   :  { %p524_p12 = scmp.lt.s32.totalorder %s522_s30, %s518_s29 }
 0x1b3   :  { %p525_p13 = por %p524_p12, %p523_p11 }
 0x1b5   :  { %p526_p0 = pnand %p525_p13, %p519_p10 }
 0x1b7   :  { %529 = shalt.err (!%p526_p0)
}
 0x1b8   :  { %389 = dma.vmem_to_hbm [thread:$0]  %s387_s25, 16, %s684_s8, [#allocation5]  }
 0x1b9   :  { %538 = dma.done.wait [#allocation3], 256  }
 0x1ba   :  { %539 = vsyncadd [#allocation3], 4294967040 }
 0x1bb   :  { %540 = dma.done.wait [#allocation5], 32  }
 0x1bc   :  { %541 = vsyncadd [#allocation5], 4294967264 }
 0x1bd   :  { %399 = vsyncpa [#allocation3], 1 }
 0x1be   :  { %400 = vsyncpa [#allocation5], 1 }

</bundles_post_ra>
